<compile_context>
chip_gen: v7x
topology: tpu7x:2x2x1
jax: 0.10.0
libtpu: 0.0.40
codegen_flags: <defaults>
</compile_context>

<pallas_src>
import functools
import math

import jax
import jax.numpy as jnp
from jax.experimental import pallas as pl
from jax.experimental.pallas import tpu as pltpu


def _round_up(x, m):
    return (x + m - 1) // m * m


def _attention_kernel(x_ref, w_ref, z_ref, attn_ref, *, scale):
    bt, s, _ = attn_ref.shape          # (bt, S, S) block
    dp = z_ref.shape[-1]               # lane-aligned (padded) head dim, multiple of 128

    # Fused QKV projection: bf16 operands on the MXU, f32 accumulation.
    # M = bt*S rows per step; the fused weight streams once per grid step.
    x2d = x_ref[...].astype(jnp.bfloat16)                          # (bt*S, F)
    w = w_ref[...]                                                 # (F, 3*Dp) bf16
    qkv = jnp.dot(x2d, w, preferred_element_type=jnp.float32)      # (bt*S, 3*Dp) f32

    # Split only the major dim (S is a multiple of the 8-row sublane tile), so this
    # reshape is a free reinterpretation — no relayout.
    qkv = qkv.reshape(bt, s, 3 * dp)

    # Dp is a multiple of 128, so each slice is vreg-lane aligned.
    q = qkv[:, :, 0:dp] * scale        # scale q (S*Dp elems), not the S*S energies
    k = qkv[:, :, dp:2 * dp]
    v = qkv[:, :, 2 * dp:3 * dp]

    # Batched q @ k^T as a contraction on D — no explicit transpose materialized.
    e = jnp.einsum(
        "bqd,bkd->bqk",
        q.astype(jnp.bfloat16), k.astype(jnp.bfloat16),
        preferred_element_type=jnp.float32,
    )                                                              # (bt, S, S) f32

    # Numerically stable softmax over the key axis, f32 throughout. `attention` is
    # an exported output of this layer, so normalize exactly (rows sum to 1); no
    # approximate reciprocal here.
    e_max = jnp.max(e, axis=-1, keepdims=True)
    p_raw = jnp.exp(e - e_max)
    p = p_raw / jnp.sum(p_raw, axis=-1, keepdims=True)

    # p @ v: bf16 MXU operands, f32 accumulation. The padded v columns are zero, so
    # the padded z columns are zero and the wrapper slice recovers the exact result.
    z = jnp.einsum(
        "bqk,bkd->bqd",
        p.astype(jnp.bfloat16), v.astype(jnp.bfloat16),
        preferred_element_type=jnp.float32,
    )                                                              # (bt, S, Dp) f32

    z_ref[...] = z.astype(z_ref.dtype)                             # lane-dense store
    attn_ref[...] = p.astype(attn_ref.dtype)
    # TODO(synk): at real sequence lengths, add a query-tile grid axis (flash-style
    # accumulator over the key axis) so the per-step footprint is tq*tk instead of
    # bt*S*S, store attn in bf16 (or drop it if unused downstream), and keep the
    # attn block's key axis >= 128 lanes so its stores are also unmasked.


def _tpu_info():
    """(num_tensorcores_per_chip, vmem_capacity_bytes) with conservative fallbacks."""
    vmem_bytes = 64 * 1024 * 1024      # v7x per-core VMEM; safe lower bound
    num_cores = 1
    try:
        info = pltpu.get_tpu_info()
        vmem_bytes = max(int(getattr(info, "vmem_capacity_bytes", vmem_bytes)),
                         32 * 1024 * 1024)
    except Exception:
        pass
    try:
        kind = jax.devices()[0].device_kind.lower()
        if "v7" in kind:               # v7x: 2 TensorCores per chip
            num_cores = 2
    except Exception:
        pass
    return num_cores, vmem_bytes


def _select_batch_tile(B, S, F, Dp, num_cores, vmem_budget_bytes):
    """Largest divisor of B whose per-step working set fits the VMEM budget and
    (if achievable) keeps the grid length >= the number of TensorCores."""

    def footprint(bt):
        x_blk = 2 * bt * S * F * 4                     # double-buffered x tile (f32)
        w_blk = 2 * F * 3 * Dp * 2                     # double-buffered weights (bf16)
        z_blk = 2 * bt * S * Dp * 4                    # double-buffered z out (f32)
        a_blk = 2 * bt * S * S * 4                     # double-buffered attn out (f32)
        interm = bt * S * (3 * Dp + Dp + 2 * S) * 4    # qkv, z, e/p live values
        return 2 * (x_blk + w_blk + z_blk + a_blk + interm)   # 2x fudge for spills

    divisors = [d for d in range(1, B + 1) if B % d == 0]
    fit = [d for d in divisors if footprint(d) <= vmem_budget_bytes] or [1]
    both = [d for d in fit if (B // d) >= num_cores]
    return max(both) if both else max(fit)


def attention_layer(x, w_q, w_k, w_v, *, batch_tile=None):
    """x: [B, S, F] float32; w_*: [F, D] (pre-transposed nn.Linear weights).

    Returns (z [B, S, D], attention [B, S, S]) matching AttentionLayer.forward
    (non-relation-aware branch)."""
    B, S, F = x.shape
    D = w_q.shape[1]
    Dp = _round_up(D, 128)             # lane-aligned per-segment width
    scale = 1.0 / math.sqrt(D)

    num_cores, vmem_bytes = _tpu_info()
    vmem_budget = int(vmem_bytes * 0.5)            # headroom below physical VMEM
    if batch_tile is None:
        batch_tile = _select_batch_tile(B, S, F, Dp, num_cores, vmem_budget)
    assert B % batch_tile == 0, "batch_tile must divide B"
    grid = (B // batch_tile,)

    # Fused, lane-aligned, zero-padded weight [F, 3*Dp] = [W_q | W_k | W_v], bf16.
    def pad(w):
        return jnp.pad(w, ((0, 0), (0, Dp - D)))

    w_qkv = jnp.concatenate([pad(w_q), pad(w_k), pad(w_v)], axis=1).astype(jnp.bfloat16)

    # Wrapper-side flatten: the kernel receives a 2-D (bt*S, F) slab, avoiding an
    # in-kernel relayout of a lane-padded (bt, S, F) tile.
    x_flat = x.reshape(B * S, F)

    kernel = functools.partial(_attention_kernel, scale=scale)

    # Advisory cost for XLA's scheduler around the custom call.
    flops = 2 * B * S * F * 3 * Dp + 2 * B * S * S * Dp + 2 * B * S * S * Dp
    cost = pl.CostEstimate(
        flops=flops,
        transcendentals=B * S * S,
        bytes_accessed=(x_flat.size * 4 + w_qkv.size * 2
                        + B * S * Dp * 4 + B * S * S * 4),
    )

    z_pad, attn = pl.pallas_call(
        kernel,
        out_shape=(
            jax.ShapeDtypeStruct((B, S, Dp), x.dtype),   # lane-dense z (sliced below)
            jax.ShapeDtypeStruct((B, S, S), x.dtype),
        ),
        grid_spec=pltpu.PrefetchScalarGridSpec(
            num_scalar_prefetch=0,
            grid=grid,
            in_specs=[
                pl.BlockSpec((batch_tile * S, F), lambda b: (b, 0)),   # x slab
                pl.BlockSpec((F, 3 * Dp), lambda b: (0, 0)),           # fused W_qkv
                # TODO(synk): at production F/D, use pipeline_mode=pl.Buffered(1) on
                # the (grid-invariant) weight spec to hold a single VMEM copy.
            ],
            out_specs=[
                pl.BlockSpec((batch_tile, S, Dp), lambda b: (b, 0, 0)),  # z (padded)
                pl.BlockSpec((batch_tile, S, S), lambda b: (b, 0, 0)),   # attention
            ],
        ),
        compiler_params=pltpu.CompilerParams(
            dimension_semantics=("parallel",),
            vmem_limit_bytes=vmem_budget,
        ),
        cost_estimate=cost,
    )(x_flat, w_qkv)

    return z_pad[:, :, :D], attn


def _reference(x, w_q, w_k, w_v):
    D = w_q.shape[1]
    q = x @ w_q
    k = x @ w_k
    v = x @ w_v
    e = jnp.einsum("bqd,bkd->bqk", q, k) / math.sqrt(D)
    p = jax.nn.softmax(e, axis=-1)
    z = jnp.einsum("bqk,bkd->bqd", p, v)
    return z, p


if __name__ == "__main__":
    # Small shapes consistent with the module: batch=2, seq=8, input_dim=16, output_dim=32.
    B, S, F, D = 2, 8, 16, 32

    key = jax.random.PRNGKey(0)
    kx, kq, kk, kv = jax.random.split(key, 4)

    x = jax.random.normal(kx, (B, S, F), dtype=jnp.float32)

    # nn.Linear(bias=False)-style init: U(-1/sqrt(in), 1/sqrt(in)), stored as [F, D].
    bound = 1.0 / math.sqrt(F)
    w_q = jax.random.uniform(kq, (F, D), jnp.float32, minval=-bound, maxval=bound)
    w_k = jax.random.uniform(kk, (F, D), jnp.float32, minval=-bound, maxval=bound)
    w_v = jax.random.uniform(kv, (F, D), jnp.float32, minval=-bound, maxval=bound)

    z, attn = attention_layer(x, w_q, w_k, w_v)
    jax.block_until_ready((z, attn))

    z_ref, attn_ref = _reference(x, w_q, w_k, w_v)

    # Tolerance reflects bf16 MXU operands (f32 accumulation); the reference is pure f32.
    assert jnp.allclose(z, z_ref, atol=3e-2, rtol=3e-2), "z mismatch"
    assert jnp.allclose(attn, attn_ref, atol=1e-2, rtol=1e-2), "attn mismatch"
    # Attention rows are exactly normalized (exported output of the layer).
    assert jnp.allclose(jnp.sum(attn, axis=-1), 1.0, atol=1e-5), "attn rows not normalized"

    print("KERNEL_OK")
</pallas_src>

<mosaic_0001>
module attributes {stable_mosaic.version = 11 : i64} {
  func.func @_attention_kernel(%arg0: i32, %arg1: memref<16x16xf32, #tpu.memory_space<vmem>>, %arg2: memref<16x384xbf16, #tpu.memory_space<vmem>>, %arg3: memref<2x8x128xf32, #tpu.memory_space<vmem>>, %arg4: memref<2x8x8xf32, #tpu.memory_space<vmem>>) attributes {dimension_semantics = [#tpu.dimension_semantics<parallel>], iteration_bounds = array<i64: 1>, scalar_prefetch = 0 : i64, scratch_operands = 0 : i64, tpu.core_type = #tpu.core_type<tc>, window_params = [{transform_indices = @transform_0, window_bounds = array<i64: 16, 16>}, {pipeline_mode = #tpu.pipeline_mode<synchronous>, transform_indices = @transform_1, window_bounds = array<i64: 16, 384>}, {transform_indices = @transform_2, window_bounds = array<i64: 2, 8, 128>}, {transform_indices = @transform_3, window_bounds = array<i64: 2, 8, 8>}]} {
    %c0 = arith.constant 0 : index
    %c0_0 = arith.constant 0 : index
    %0 = vector.load %arg1[%c0, %c0_0] : memref<16x16xf32, #tpu.memory_space<vmem>>, vector<16x16xf32>
    %1 = arith.truncf %0 : vector<16x16xf32> to vector<16x16xbf16>
    %c0_1 = arith.constant 0 : index
    %c0_2 = arith.constant 0 : index
    %2 = vector.load %arg2[%c0_1, %c0_2] : memref<16x384xbf16, #tpu.memory_space<vmem>>, vector<16x384xbf16>
    %cst = arith.constant dense<0.000000e+00> : vector<16x384xf32>
    %3 = tpu.matmul %1, %2, %cst {dimension_numbers = #tpu.dot_dimension_numbers<[1], [0], [0], [1], [0, 0, 1, 1], [], []>} : vector<16x16xbf16>, vector<16x384xbf16>, vector<16x384xf32> -> vector<16x384xf32>
    %4 = vector.shape_cast %3 : vector<16x384xf32> to vector<2x8x384xf32>
    %5 = vector.extract_strided_slice %4 {offsets = [0, 0, 0], sizes = [2, 8, 128], strides = [1, 1, 1]} : vector<2x8x384xf32> to vector<2x8x128xf32>
    %cst_3 = arith.constant 0.176776692 : f32
    %6 = vector.broadcast %cst_3 : f32 to vector<2x8x128xf32>
    %7 = arith.mulf %5, %6 : vector<2x8x128xf32>
    %8 = vector.extract_strided_slice %4 {offsets = [0, 0, 128], sizes = [2, 8, 128], strides = [1, 1, 1]} : vector<2x8x384xf32> to vector<2x8x128xf32>
    %9 = vector.extract_strided_slice %4 {offsets = [0, 0, 256], sizes = [2, 8, 128], strides = [1, 1, 1]} : vector<2x8x384xf32> to vector<2x8x128xf32>
    %10 = arith.truncf %7 : vector<2x8x128xf32> to vector<2x8x128xbf16>
    %11 = arith.truncf %8 : vector<2x8x128xf32> to vector<2x8x128xbf16>
    "tpu.trace_start"() <{level = 10 : i32, message = "bqd,bkd->bqk"}> : () -> ()
    %cst_4 = arith.constant dense<0.000000e+00> : vector<2x8x8xf32>
    %12 = tpu.matmul %10, %11, %cst_4 {dimension_numbers = #tpu.dot_dimension_numbers<[2], [2], [1], [1], [0, 0, 0, 1, 1, 1], [0], [0]>} : vector<2x8x128xbf16>, vector<2x8x128xbf16>, vector<2x8x8xf32> -> vector<2x8x8xf32>
    "tpu.trace_stop"() : () -> ()
    %cst_5 = arith.constant dense<0xFF800000> : vector<2x8xf32>
    %13 = vector.multi_reduction <maximumf>, %12, %cst_5 [2] : vector<2x8x8xf32> to vector<2x8xf32>
    %14 = vector.shape_cast %13 : vector<2x8xf32> to vector<2x8x1xf32>
    %15 = vector.broadcast %14 : vector<2x8x1xf32> to vector<2x8x8xf32>
    %16 = arith.subf %12, %15 : vector<2x8x8xf32>
    %17 = math.exp %16 : vector<2x8x8xf32>
    %cst_6 = arith.constant dense<0.000000e+00> : vector<2x8xf32>
    %18 = vector.multi_reduction <add>, %17, %cst_6 [2] : vector<2x8x8xf32> to vector<2x8xf32>
    %19 = vector.shape_cast %18 : vector<2x8xf32> to vector<2x8x1xf32>
    %20 = vector.broadcast %19 : vector<2x8x1xf32> to vector<2x8x8xf32>
    %21 = arith.divf %17, %20 : vector<2x8x8xf32>
    %22 = arith.truncf %21 : vector<2x8x8xf32> to vector<2x8x8xbf16>
    %23 = arith.truncf %9 : vector<2x8x128xf32> to vector<2x8x128xbf16>
    "tpu.trace_start"() <{level = 10 : i32, message = "bqk,bkd->bqd"}> : () -> ()
    %cst_7 = arith.constant dense<0.000000e+00> : vector<2x8x128xf32>
    %24 = tpu.matmul %22, %23, %cst_7 {dimension_numbers = #tpu.dot_dimension_numbers<[2], [1], [1], [2], [0, 0, 0, 1, 1, 2], [0], [0]>} : vector<2x8x8xbf16>, vector<2x8x128xbf16>, vector<2x8x128xf32> -> vector<2x8x128xf32>
    "tpu.trace_stop"() : () -> ()
    %c0_8 = arith.constant 0 : index
    %c0_9 = arith.constant 0 : index
    %c0_10 = arith.constant 0 : index
    %25 = vector.load %arg3[%c0_8, %c0_9, %c0_10] : memref<2x8x128xf32, #tpu.memory_space<vmem>>, vector<2x8x128xf32>
    tpu.vector_store %arg3[%c0_8, %c0_9, %c0_10], %24 {strides = array<i32>} : memref<2x8x128xf32, #tpu.memory_space<vmem>>, vector<2x8x128xf32>,
    %c0_11 = arith.constant 0 : index
    %c0_12 = arith.constant 0 : index
    %c0_13 = arith.constant 0 : index
    %26 = vector.load %arg4[%c0_11, %c0_12, %c0_13] : memref<2x8x8xf32, #tpu.memory_space<vmem>>, vector<2x8x8xf32>
    tpu.vector_store %arg4[%c0_11, %c0_12, %c0_13], %21 {strides = array<i32>} : memref<2x8x8xf32, #tpu.memory_space<vmem>>, vector<2x8x8xf32>,
    return
  }
  func.func @transform_0(%arg0: i32) -> (i32, i32) {
    %c0_i32 = arith.constant 0 : i32
    %c0_i32_0 = arith.constant 0 : i32
    return %arg0, %c0_i32 : i32, i32
  }
  func.func @transform_1(%arg0: i32) -> (i32, i32) {
    %c0_i32 = arith.constant 0 : i32
    %c0_i32_0 = arith.constant 0 : i32
    %c0_i32_1 = arith.constant 0 : i32
    return %c0_i32, %c0_i32_0 : i32, i32
  }
  func.func @transform_2(%arg0: i32) -> (i32, i32, i32) {
    %c0_i32 = arith.constant 0 : i32
    %c0_i32_0 = arith.constant 0 : i32
    %c0_i32_1 = arith.constant 0 : i32
    return %arg0, %c0_i32, %c0_i32_0 : i32, i32, i32
  }
  func.func @transform_3(%arg0: i32) -> (i32, i32, i32) {
    %c0_i32 = arith.constant 0 : i32
    %c0_i32_0 = arith.constant 0 : i32
    %c0_i32_1 = arith.constant 0 : i32
    return %arg0, %c0_i32, %c0_i32_0 : i32, i32, i32
  }
}

</mosaic_0001>

<bundles_post_ra>
// kernel: tpu_custom_call.1
= control target key start
LH: loop header
LB: loop body
LE: loop exit
PB: predicated region body
PF: predicated region fallthrough
CT: control target
= control target key end

     0   :  { %9 = vsyncpa [#allocation3], 0  ;;  %s666_s0 = inlined_call_operand.hbm [shape: f32[16,16], index: 0, kind: input, shape index: {}]   ;;  %s667_s1 = inlined_call_operand.hbm [shape: bf16[16,384], index: 1, kind: input, shape index: {}]   ;;  %s668_s2 = inlined_call_operand.hbm [shape: f32[2,8,128], index: 2, kind: output, shape index: {0}]   ;;  %s669_s3 = inlined_call_operand.hbm [shape: f32[2,8,8], index: 3, kind: output, shape index: {1}]  }
   0x1   :  { %10 = vsyncpa [#allocation6], 0 }
   0x2   :  { %11 = vsyncpa [#allocation4], 0 }
   0x3   :  { %12 = vsyncpa [#allocation9], 0  ;;  %s565_s12 = smov [#allocation2]   ;;  %s469_s16 = scalar_lea.hbm %s666_s0, 256 }
   0x4   :  { %s18_s13 = sshll.u32 %s565_s12, 4  ;;  %p470_p0 = scmp.ne.s32.totalorder %s666_s0, %s469_s16  ;;  %s19_s13 = int_to_ptr.vmem [resolvable:$true] %s18_s13 }
   0x5   :  { %p473_p1 = scmp.lt.u32.totalorder %s469_s16, %s666_s0 }
   0x7   :  { %p475_p2 = pnand %p473_p1, %p470_p0 }
   0x9   :  { %478 = shalt.err (!%p475_p2)
}
   0xa   :  { %s479_s21 = scalar_lea.vmem %s19_s13, 256  ;;  %p484_p4 = scmp.lt.s32.totalorder %s19_s13, %s19_s13 }
   0xb   :  { %p480_p3 = scmp.ne.s32.totalorder %s19_s13, %s479_s21  ;;  %p485_p5 = scmp.lt.s32.totalorder %s479_s21, %s479_s21 }
   0xd   :  { %p486_p6 = por %p485_p5, %p484_p4 }
   0xf   :  { %p487_p7 = pnand %p486_p6, %p480_p3 }
  0x11   :  { %490 = shalt.err (!%p487_p7)
}
  0x12   :  { %s566_s22 = smov 128   ;;  %s567_s23 = smov 8  }
  0x13   :  { %24 = dma.hbm_to_vmem [thread:$0]  %s666_s0, 256, %s19_s13, [#allocation3], %s566_s22, %s566_s22, %s567_s23  }
  0x14   :  { %s568_s26 = smov [#allocation5]   ;;  %s491_s30 = scalar_lea.hbm %s667_s1, 384 }
  0x15   :  { %s30_s27 = sshll.u32 %s568_s26, 4  ;;  %p492_p8 = scmp.ne.s32.totalorder %s667_s1, %s491_s30  ;;  %s31_s27 = int_to_ptr.vmem [resolvable:$true] %s30_s27 }
  0x16   :  { %p495_p9 = scmp.lt.u32.totalorder %s491_s30, %s667_s1 }
  0x18   :  { %p497_p10 = pnand %p495_p9, %p492_p8 }
  0x1a   :  { %500 = shalt.err (!%p497_p10)
}
  0x1b   :  { %s501_s8 = scalar_lea.vmem %s31_s27, 384  ;;  %p506_p12 = scmp.lt.s32.totalorder %s31_s27, %s31_s27 }
  0x1c   :  { %p502_p11 = scmp.ne.s32.totalorder %s31_s27, %s501_s8  ;;  %p507_p13 = scmp.lt.s32.totalorder %s501_s8, %s501_s8 }
  0x1e   :  { %p508_p0 = por %p507_p13, %p506_p12 }
  0x20   :  { %p509_p1 = pnand %p508_p0, %p502_p11 }
  0x22   :  { %512 = shalt.err (!%p509_p1)
}
  0x23   :  { %s569_s0 = smov 192   ;;  %s570_s9 = smov 12  }
  0x24   :  { %36 = dma.hbm_to_vmem [thread:$0]  %s667_s1, 384, %s31_s27, [#allocation6], %s569_s0, %s569_s0, %s570_s9  }
  0x25   :  { %557 = dma.done.wait [#allocation3], 256  }
  0x26   :  { %558 = vsyncadd [#allocation3], 4294967040 }
  0x27   :  { %559 = dma.done.wait [#allocation6], 384  }
  0x28   :  { %560 = vsyncadd [#allocation6], 4294966912  ;;  %v571_v0 = vmov 0   ;;  %v572_v1 = vmov 0.0   ;;  %v457_v2 = vld [vmem:[#allocation5 + $0x4] ss:$12 sps:$4 sm:$0xff]  }
  0x29   :  { %103 = vmatprep.mubr.bf16.mxu0 %v571_v0  ;;  %416 = vmatprep.subr.bf16.mxu1 %v572_v1  ;;  %v459_v3 = vld [vmem:[#allocation5] ss:$12 sps:$4 sm:$0xff]   ;;  %v44_v4 = vld [vmem:[#allocation2] sm:$0xff]  ;;  %v45_v5 = vld [vmem:[#allocation2 + $0x8] sm:$0xff]  ;;  %vm67_vm0 = vcmask 130048   ;;  %vm573_vm1 = vmmov 0  }
  0x2a   :  { %71 = vmatprep.subr.bf16.mxu0 %v457_v2  ;;  %v46_v6 = vpack.c.bf16 %v45_v5, %v44_v4  ;;  %v460_v7 = vld [vmem:[#allocation5 + $0x8] ss:$12 sps:$4 sm:$0xff]   ;;  %418 = vmatprep.mubr.msk.bf16.mxu1 %vm573_vm1, %v572_v1  ;;  %vm271_vm2 = vcmask 1043456   ;;  %vm241_vm3 = vcmask 64512   ;;  %s574_s1 = smov [#allocation8]  }
  0x2b   :  { %72 = vmatpush1.bf16.msra.mxu0 %v459_v3  ;;  %417 = vmatpush3.bf16.msra.mxu1 %v460_v7  ;;  %s382_s12 = sshll.u32 %s574_s1, 4  ;;  %s383_s12 = int_to_ptr.vmem [resolvable:$true] %s382_s12 }
  0x2c   :  { %422 = vmatprep.subr.bf16.mxu0 %v572_v1  ;;  %428 = vmatprep.subr.bf16.mxu1 %v572_v1  ;;  %s513_s13 = scalar_lea.vmem %s383_s12, 256  ;;  %p518_p3 = scmp.lt.s32.totalorder %s383_s12, %s383_s12 }
  0x2d   :  { %p514_p2 = scmp.ne.s32.totalorder %s383_s12, %s513_s13  ;;  %p519_p4 = scmp.lt.s32.totalorder %s513_s13, %s513_s13 }
  0x2e   :  { %402 = vmatmul.mubr.msk.bf16.vlgmr.msra.gmra.mrb[0].mxu0 %vm67_vm0, %v46_v6  ;;  %419 = vmatmul.mubr.msk.bf16.vlgmr.msra.gmra.mrb[0].mxu1 %vm67_vm0, %v46_v6 }
  0x2f   :  { %424 = vmatprep.mubr.msk.bf16.mxu0 %vm573_vm1, %v572_v1  ;;  %430 = vmatprep.mubr.msk.bf16.mxu1 %vm573_vm1, %v572_v1  ;;  %p520_p5 = por %p519_p4, %p518_p3 }
  0x31   :  { %p521_p6 = pnand %p520_p5, %p514_p2 }
 0x101   :  { %v105_v8 = vpop.f32.mrb[0].mxu0  ;;  %v148_v18 = vpop.f32.mrb[0].mxu1 }
 0x102   :  { %v107_v9 = vpop.f32.mrb[1].mxu0  ;;  %v155_v14 = vmul.f32 0.17677669, %v105_v8  ;;  %v266_v19 = vpack.c.bf16 %v148_v18, %v148_v18  ;;  %v420_v20 = vpop.f32.mrb[1].mxu1 }
 0x103   :  { %v159_v10 = vpack.c.bf16 %v107_v9, %v107_v9  ;;  %v109_v11 = vpop.f32.mrb[2].mxu0  ;;  %v151_v21 = vpop.f32.mrb[2].mxu1 }
 0x104   :  { %v111_v12 = vpop.f32.mrb[3].mxu0  ;;  %v156_v15 = vmul.f32 0.17677669, %v109_v11  ;;  %v157_v16 = vpack.c.bf16 %v155_v14, %v155_v14  ;;  %v273_v22 = vsel %vm271_vm2, %v266_v19, 0  ;;  %v267_v23 = vpack.c.bf16 %v151_v21, %v151_v21  ;;  %v421_v24 = vpop.f32.mrb[3].mxu1 }
 0x105   :  { %v160_v13 = vpack.c.bf16 %v111_v12, %v111_v12  ;;  %423 = vmatpush3.bf16.xpose.msra.mxu0 %v159_v10 }
 0x106   :  { %434 = vmatprep.subr.bf16.mxu0 %v572_v1  ;;  %v158_v17 = vpack.c.bf16 %v156_v15, %v156_v15  ;;  %v319_v25 = vsel %vm271_vm2, %v267_v23, 0 }
 0x107   :  { %429 = vmatpush3.bf16.xpose.msra.mxu1 %v160_v13 }
 0x108   :  { %440 = vmatprep.subr.bf16.mxu1 %v572_v1 }
 0x10c   :  { %425 = vmatmul.mubr.bf16.vlgmr.msra.gmra.mrb[4].mxu0 %v157_v16 }
 0x10d   :  { %436 = vmatprep.mubr.msk.bf16.mxu0 %vm573_vm1, %v572_v1  ;;  %435 = vmatpush3.bf16.msra.mxu0 %v273_v22 }
 0x10e   :  { %431 = vmatmul.mubr.bf16.vlgmr.msra.gmra.mrb[4].mxu1 %v158_v17 }
 0x10f   :  { %442 = vmatprep.mubr.msk.bf16.mxu1 %vm573_vm1, %v572_v1  ;;  %441 = vmatpush3.bf16.msra.mxu1 %v319_v25 }
 0x1df   :  { %v195_v26 = vpop.f32.mrb[4].mxu0 }
 0x1e0   :  { %v426_v27 = vpop.f32.mrb[5].mxu0  ;;  %v242_v28 = vsel %vm241_vm3, %v195_v26, -inf }
 0x1e1   :  { %243 = vmax.xlane.f32.xlu0 %v242_v28  ;;  %v198_v29 = vpop.f32.mrb[6].mxu0  ;;  %v235_v30 = vpop.f32.mrb[4].mxu1 }
 0x1e2   :  { %v427_v31 = vpop.f32.mrb[7].mxu0  ;;  %v432_v32 = vpop.f32.mrb[5].mxu1  ;;  %v245_v35 = vsel %vm241_vm3, %v235_v30, -inf }
 0x1e3   :  { %v238_v33 = vpop.f32.mrb[6].mxu1 }
 0x1e4   :  { %v433_v34 = vpop.f32.mrb[7].mxu1 }
 0x1e5   :  { %246 = vmax.xlane.f32.xlu0 %v245_v35 }
 0x26e   :  { %v244_v36 = vpop.xlane.xlu0 %243 }
 0x26f   :  { %v248_v37 = vsub.f32 %v195_v26, %v244_v36 }
 0x271   :  { %v250_v38 = vmul.f32 1.442695, %v248_v37 }
 0x272   :  { %v247_v39 = vpop.xlane.xlu0 %246 }
 0x273   :  { %461 = vpow2.f32 %v250_v38  ;;  %v249_v40 = vsub.f32 %v235_v30, %v247_v39 }
 0x275   :  { %v252_v41 = vmul.f32 1.442695, %v249_v40 }
 0x277   :  { %463 = vpow2.f32 %v252_v41 }
 0x27d   :  { %v462_v42 = vpop.eup %461 }
 0x27e   :  { %v254_v43 = vsel %vm241_vm3, %v462_v42, 0.0 }
 0x27f   :  { %255 = vadd.xlane.f32.xlu1 %v254_v43 }
 0x281   :  { %v464_v44 = vpop.eup %463 }
 0x282   :  { %v257_v45 = vsel %vm241_vm3, %v464_v44, 0.0 }
 0x283   :  { %258 = vadd.xlane.f32.xlu1 %v257_v45 }
 0x30c   :  { %v256_v46 = vpop.xlane.xlu1 %255 }
 0x30d   :  { %465 = vrcp.f32 %v256_v46 }
 0x310   :  { %v259_v47 = vpop.xlane.xlu1 %258 }
 0x311   :  { %467 = vrcp.f32 %v259_v47 }
 0x317   :  { %v466_v48 = vpop.eup %465 }
 0x318   :  { %v261_v49 = vmul.f32 %v466_v48, %v462_v42 }
 0x31a   :  { %363 = vst.msk [vmem:[#allocation8] sm:$0xff] %vm241_vm3, %v261_v49  ;;  %v264_v50 = vpack.c.bf16 %v261_v49, %v261_v49 }
 0x31b   :  { %v468_v51 = vpop.eup %467 }
 0x31c   :  { %v263_v52 = vmul.f32 %v468_v51, %v464_v44  ;;  %437 = vmatmul.mubr.msk.bf16.vlgmr.msra.gmra.mrb[8].mxu0 %vm241_vm3, %v264_v50 }
 0x31e   :  { %364 = vst.msk [vmem:[#allocation8 + $0x8] sm:$0xff] %vm241_vm3, %v263_v52  ;;  %v265_v53 = vpack.c.bf16 %v263_v52, %v263_v52 }
 0x320   :  { %443 = vmatmul.mubr.msk.bf16.vlgmr.msra.gmra.mrb[8].mxu1 %vm241_vm3, %v265_v53 }
 0x321   :  { %524 = shalt.err (!%p521_p6)
}
 0x322   :  { %s525_s16 = scalar_lea.hbm %s669_s3, 256 }
 0x323   :  { %p526_p7 = scmp.ne.s32.totalorder %s669_s3, %s525_s16  ;;  %p529_p8 = scmp.lt.u32.totalorder %s525_s16, %s669_s3 }
 0x325   :  { %p531_p9 = pnand %p529_p8, %p526_p7 }
 0x327   :  { %534 = shalt.err (!%p531_p9)
}
 0x328   :  { %388 = dma.vmem_to_hbm [thread:$0]  %s383_s12, 256, %s669_s3, [#allocation9], %s566_s22, %s566_s22, %s567_s23  }
 0x329   :  { %s575_s25 = smov [#allocation7]  }
 0x32a   :  { %s370_s26 = sshll.u32 %s575_s25, 4  ;;  %s371_s26 = int_to_ptr.vmem [resolvable:$true] %s370_s26 }
 0x32b   :  { %s535_s27 = scalar_lea.vmem %s371_s26, 256  ;;  %p540_p11 = scmp.lt.s32.totalorder %s371_s26, %s371_s26 }
 0x32c   :  { %p536_p10 = scmp.ne.s32.totalorder %s371_s26, %s535_s27  ;;  %p541_p12 = scmp.lt.s32.totalorder %s535_s27, %s535_s27 }
 0x32e   :  { %p542_p13 = por %p541_p12, %p540_p11 }
 0x330   :  { %p543_p0 = pnand %p542_p13, %p536_p10 }
 0x3ef   :  { %v309_v54 = vpop.f32.mrb[8].mxu0 }
 0x3f0   :  { %361 = vst [vmem:[#allocation7] sm:$0xff] %v309_v54  ;;  %v438_v55 = vpop.f32.mrb[9].mxu0 }
 0x3f1   :  { %v312_v56 = vpop.f32.mrb[10].mxu0 }
 0x3f2   :  { %v439_v57 = vpop.f32.mrb[11].mxu0 }
 0x3f3   :  { %v355_v58 = vpop.f32.mrb[8].mxu1 }
 0x3f4   :  { %362 = vst [vmem:[#allocation7 + $0x8] sm:$0xff] %v355_v58  ;;  %v444_v59 = vpop.f32.mrb[9].mxu1 }
 0x3f5   :  { %v358_v60 = vpop.f32.mrb[10].mxu1 }
 0x3f6   :  { %546 = shalt.err (!%p543_p0)
}
 0x3f7   :  { %s547_s29 = scalar_lea.hbm %s668_s2, 256 }
 0x3f8   :  { %p548_p1 = scmp.ne.s32.totalorder %s668_s2, %s547_s29  ;;  %p551_p2 = scmp.lt.u32.totalorder %s547_s29, %s668_s2 }
 0x3fa   :  { %p553_p3 = pnand %p551_p2, %p548_p1 }
 0x3fc   :  { %556 = shalt.err (!%p553_p3)
}
 0x3fd   :  { %376 = dma.vmem_to_hbm [thread:$0]  %s371_s26, 256, %s668_s2, [#allocation4], %s566_s22, %s566_s22, %s567_s23   ;;  %v445_v61 = vpop.f32.mrb[11].mxu1 }
 0x3fe   :  { %561 = dma.done.wait [#allocation4], 256  }
 0x3ff   :  { %562 = vsyncadd [#allocation4], 4294967040 }
 0x400   :  { %563 = dma.done.wait [#allocation9], 256  }
 0x401   :  { %564 = vsyncadd [#allocation9], 4294967040 }
 0x402   :  { %395 = vsyncpa [#allocation3], 1 }
 0x403   :  { %396 = vsyncpa [#allocation6], 1 }
 0x404   :  { %397 = vsyncpa [#allocation4], 1 }
 0x405   :  { %398 = vsyncpa [#allocation9], 1 }

</bundles_post_ra>
